<compile_context>
chip_gen: v5e
topology: v5e:2x2
jax: 0.10.0
libtpu: 0.0.40
codegen_flags: <defaults>
</compile_context>

<pallas_src>
import jax
import jax.numpy as jnp
from jax.experimental import pallas as pl
from jax.experimental.pallas import tpu as pltpu


def attention_kernel(x_ref, w_ref, b_ref, o_ref):
    # x_ref / o_ref : (1, C, T) VMEM tile (lane axis = spatial)
    # w_ref         : (C,) float32 in SMEM   (1x1 conv weight, out_channels=1)
    # b_ref         : (1,) float32 in SMEM   (conv bias)
    c_dim = x_ref.shape[1]

    # 1x1 conv over channels == C scalar FMAs of full-lane rows (VPU).
    # Per-channel ref reads keep live ranges short (no whole-tile f32 value).
    # TODO(synk): for C >~ 32 switch this unrolled chain to a sublane reduce.
    s = x_ref[:, 0, :].astype(jnp.float32) * w_ref[0]            # (1, T) f32
    for c in range(1, c_dim):
        s = s + x_ref[:, c, :].astype(jnp.float32) * w_ref[c]

    # sigmoid(s + b) = 1 / (1 + exp(-(s + b))): exp on the EUP, approximate
    # reciprocal on the EUP, then one Newton step to recover ~f32 accuracy
    # (keeps the divide off the VALU slot at negligible extra vector work).
    d = 1.0 + jnp.exp(-(s + b_ref[0]))                           # (1, T) f32
    r = pl.reciprocal(d, approx=True)
    att = r * (2.0 - d * r)                                      # refined 1/d

    # Gate in the input dtype (bf16 VALU on v6e/v7x; no-op for f32 inputs).
    # The tile value is only live for this single fused multiply+store.
    gate = att.astype(x_ref.dtype)[:, None, :]                   # (1, 1, T)
    o_ref[...] = (x_ref[...] * gate).astype(o_ref.dtype)


def _vmem_capacity_bytes():
    try:
        info = pltpu.get_tpu_info()
        cap = int(getattr(info, "vmem_capacity_bytes", 0) or 0)
        if cap > 0:
            return cap
    except Exception:
        pass
    return 64 * 1024 * 1024  # conservative default (v7x per-core VMEM)


def _pick_tile_hw(hw, c, itemsize, batch, vmem_bytes):
    """Choose the lane-tile size, grid extent and the sublane-padded block bytes."""
    sublane = {4: 8, 2: 16, 1: 32}.get(itemsize, 8)
    c_pad = -(-c // sublane) * sublane          # sublane-padded channel rows
    row_bytes = c_pad * itemsize                # padded bytes per lane column

    # Padded per-block target ~vmem/12: double-buffered in+out (4x block) plus
    # elementwise temporaries (~2x block) stays near half of VMEM.
    target_block_bytes = max(1 << 20, vmem_bytes // 12)
    budget_tile = max(128, (target_block_bytes // row_bytes) // 128 * 128)

    # Keep >= ~8 total grid steps so v7x's two TensorCores (and the
    # double-buffer pipeline) stay fed even for small batch.
    tiles_per_batch = -(-8 // max(1, batch))
    parallel_tile = max(128, (hw // tiles_per_batch) // 128 * 128)

    tile = min(budget_tile, parallel_tile)
    if tile >= hw:
        tile = hw                               # single full-extent block (allowed)
    num_tiles = -(-hw // tile)                  # cdiv grid; last block masked
    block_bytes = c_pad * tile * itemsize
    return tile, num_tiles, block_bytes


def attention_module(x_nchw, weight, bias):
    """x_nchw: (B, C, H, W); weight: (1, C, 1, 1); bias: (1,)."""
    B, C, H, W = x_nchw.shape
    HW = H * W

    # Channels-small / spatial-large layout, no transpose (pure reshape).
    x3d = x_nchw.reshape(B, C, HW)
    itemsize = jnp.dtype(x3d.dtype).itemsize

    vmem_cap = _vmem_capacity_bytes()
    tile_hw, num_tiles, block_bytes = _pick_tile_hw(HW, C, itemsize, B, vmem_cap)

    # VMEM budget from the actual footprint: 2 buffers x (in + out) blocks,
    # plus elementwise-temp headroom, capped under the physical capacity.
    vmem_limit = int(min(int(vmem_cap * 0.9),
                         max(32 << 20, 6 * block_bytes + (4 << 20))))

    w1d = weight.reshape(C).astype(jnp.float32)   # SMEM scalars
    b1d = bias.reshape(1).astype(jnp.float32)     # SMEM scalar

    out3d = pl.pallas_call(
        attention_kernel,
        out_shape=jax.ShapeDtypeStruct((B, C, HW), x3d.dtype),
        grid_spec=pltpu.PrefetchScalarGridSpec(
            num_scalar_prefetch=0,
            grid=(B, num_tiles),
            in_specs=[
                # x tile: lane-dense spatial blocks (masked ragged last block ok)
                pl.BlockSpec((1, C, tile_hw), lambda b, j: (b, 0, j)),
                # weight / bias: whole arrays resident in SMEM, no per-step VMEM DMA
                pl.BlockSpec(memory_space=pltpu.MemorySpace.SMEM),
                pl.BlockSpec(memory_space=pltpu.MemorySpace.SMEM),
            ],
            out_specs=pl.BlockSpec((1, C, tile_hw), lambda b, j: (b, 0, j)),
        ),
        compiler_params=pltpu.CompilerParams(
            dimension_semantics=("parallel", "parallel"),
            vmem_limit_bytes=vmem_limit,
        ),
    )(x3d, w1d, b1d)

    return out3d.reshape(B, C, H, W)


def attention_module_ref(x_nchw, weight, bias):
    # Pure-JAX reference for the PyTorch forward.
    w = weight.reshape(1, -1, 1, 1)                     # (1, C, 1, 1)
    s = jnp.sum(x_nchw * w, axis=1, keepdims=True) + bias.reshape(1, 1, 1, 1)
    return x_nchw * jax.nn.sigmoid(s)


if __name__ == "__main__":
    key = jax.random.PRNGKey(0)
    kx, kw, kb = jax.random.split(key, 3)

    B, C, H, W = 2, 4, 16, 16
    x = jax.random.normal(kx, (B, C, H, W), dtype=jnp.float32)
    # Deterministic parameter init (Conv2d(in_channels=C, out=1, kernel=1))
    weight = jax.random.normal(kw, (1, C, 1, 1), dtype=jnp.float32) * 0.1
    bias = jax.random.normal(kb, (1,), dtype=jnp.float32) * 0.1

    out = attention_module(x, weight, bias)
    out = jax.block_until_ready(out)

    ref = attention_module_ref(x, weight, bias)
    assert out.shape == (B, C, H, W)
    assert jnp.allclose(out, ref, atol=1e-5, rtol=1e-5), "mismatch vs reference"

    print("KERNEL_OK")
</pallas_src>

<mosaic_0001>
module attributes {stable_mosaic.version = 11 : i64} {
  func.func @attention_kernel(%arg0: i32, %arg1: i32, %arg2: memref<1x4x128xf32, #tpu.memory_space<vmem>>, %arg3: memref<4xf32, #tpu.memory_space<smem>>, %arg4: memref<1xf32, #tpu.memory_space<smem>>, %arg5: memref<1x4x128xf32, #tpu.memory_space<vmem>>) attributes {dimension_semantics = [#tpu.dimension_semantics<parallel>, #tpu.dimension_semantics<parallel>], iteration_bounds = array<i64: 2, 2>, scalar_prefetch = 0 : i64, scratch_operands = 0 : i64, tpu.core_type = #tpu.core_type<tc>, window_params = [{transform_indices = @transform_0, window_bounds = array<i64: 1, 4, 128>}, {transform_indices = @transform_1, window_bounds = array<i64: 4>}, {transform_indices = @transform_2, window_bounds = array<i64: 1>}, {transform_indices = @transform_3, window_bounds = array<i64: 1, 4, 128>}]} {
    %c0 = arith.constant 0 : index
    %c0_0 = arith.constant 0 : index
    %c0_1 = arith.constant 0 : index
    %0 = vector.load %arg2[%c0, %c0_0, %c0_1] : memref<1x4x128xf32, #tpu.memory_space<vmem>>, vector<1x1x128xf32>
    %1 = vector.shape_cast %0 : vector<1x1x128xf32> to vector<1x128xf32>
    %c0_2 = arith.constant 0 : index
    %2 = memref.load %arg3[%c0_2] : memref<4xf32, #tpu.memory_space<smem>>
    %3 = vector.broadcast %2 : f32 to vector<1x128xf32>
    %4 = arith.mulf %1, %3 : vector<1x128xf32>
    %c0_3 = arith.constant 0 : index
    %c1 = arith.constant 1 : index
    %c0_4 = arith.constant 0 : index
    %5 = vector.load %arg2[%c0_3, %c1, %c0_4] : memref<1x4x128xf32, #tpu.memory_space<vmem>>, vector<1x1x128xf32>
    %6 = vector.shape_cast %5 : vector<1x1x128xf32> to vector<1x128xf32>
    %c1_5 = arith.constant 1 : index
    %7 = memref.load %arg3[%c1_5] : memref<4xf32, #tpu.memory_space<smem>>
    %8 = vector.broadcast %7 : f32 to vector<1x128xf32>
    %9 = arith.mulf %6, %8 : vector<1x128xf32>
    %10 = arith.addf %4, %9 : vector<1x128xf32>
    %c0_6 = arith.constant 0 : index
    %c2 = arith.constant 2 : index
    %c0_7 = arith.constant 0 : index
    %11 = vector.load %arg2[%c0_6, %c2, %c0_7] : memref<1x4x128xf32, #tpu.memory_space<vmem>>, vector<1x1x128xf32>
    %12 = vector.shape_cast %11 : vector<1x1x128xf32> to vector<1x128xf32>
    %c2_8 = arith.constant 2 : index
    %13 = memref.load %arg3[%c2_8] : memref<4xf32, #tpu.memory_space<smem>>
    %14 = vector.broadcast %13 : f32 to vector<1x128xf32>
    %15 = arith.mulf %12, %14 : vector<1x128xf32>
    %16 = arith.addf %10, %15 : vector<1x128xf32>
    %c0_9 = arith.constant 0 : index
    %c3 = arith.constant 3 : index
    %c0_10 = arith.constant 0 : index
    %17 = vector.load %arg2[%c0_9, %c3, %c0_10] : memref<1x4x128xf32, #tpu.memory_space<vmem>>, vector<1x1x128xf32>
    %18 = vector.shape_cast %17 : vector<1x1x128xf32> to vector<1x128xf32>
    %c3_11 = arith.constant 3 : index
    %19 = memref.load %arg3[%c3_11] : memref<4xf32, #tpu.memory_space<smem>>
    %20 = vector.broadcast %19 : f32 to vector<1x128xf32>
    %21 = arith.mulf %18, %20 : vector<1x128xf32>
    %22 = arith.addf %16, %21 : vector<1x128xf32>
    %c0_12 = arith.constant 0 : index
    %23 = memref.load %arg4[%c0_12] : memref<1xf32, #tpu.memory_space<smem>>
    %24 = vector.broadcast %23 : f32 to vector<1x128xf32>
    %25 = arith.addf %22, %24 : vector<1x128xf32>
    %cst = arith.constant 0.000000e+00 : f32
    %26 = vector.broadcast %cst : f32 to vector<1x128xf32>
    %27 = arith.subf %26, %25 : vector<1x128xf32>
    %28 = math.exp %27 : vector<1x128xf32>
    %cst_13 = arith.constant 1.000000e+00 : f32
    %29 = vector.broadcast %cst_13 : f32 to vector<1x128xf32>
    %30 = arith.addf %29, %28 : vector<1x128xf32>
    %31 = tpu.reciprocal %30 {approx = true} : vector<1x128xf32> -> vector<1x128xf32>
    %32 = arith.mulf %30, %31 : vector<1x128xf32>
    %cst_14 = arith.constant 2.000000e+00 : f32
    %33 = vector.broadcast %cst_14 : f32 to vector<1x128xf32>
    %34 = arith.subf %33, %32 : vector<1x128xf32>
    %35 = arith.mulf %31, %34 : vector<1x128xf32>
    %36 = vector.shape_cast %35 : vector<1x128xf32> to vector<1x1x128xf32>
    %c0_15 = arith.constant 0 : index
    %c0_16 = arith.constant 0 : index
    %c0_17 = arith.constant 0 : index
    %37 = vector.load %arg2[%c0_15, %c0_16, %c0_17] : memref<1x4x128xf32, #tpu.memory_space<vmem>>, vector<1x4x128xf32>
    %38 = vector.broadcast %36 : vector<1x1x128xf32> to vector<1x4x128xf32>
    %39 = arith.mulf %37, %38 : vector<1x4x128xf32>
    %c0_18 = arith.constant 0 : index
    %c0_19 = arith.constant 0 : index
    %c0_20 = arith.constant 0 : index
    %40 = vector.load %arg5[%c0_18, %c0_19, %c0_20] : memref<1x4x128xf32, #tpu.memory_space<vmem>>, vector<1x4x128xf32>
    tpu.vector_store %arg5[%c0_18, %c0_19, %c0_20], %39 {strides = array<i32>} : memref<1x4x128xf32, #tpu.memory_space<vmem>>, vector<1x4x128xf32>,
    return
  }
  func.func @transform_0(%arg0: i32, %arg1: i32) -> (i32, i32, i32) {
    %c0_i32 = arith.constant 0 : i32
    %c0_i32_0 = arith.constant 0 : i32
    return %arg0, %c0_i32, %arg1 : i32, i32, i32
  }
  func.func @transform_1(%arg0: i32, %arg1: i32) -> i32 {
    %c0_i32 = arith.constant 0 : i32
    %c0_i32_0 = arith.constant 0 : i32
    return %c0_i32 : i32
  }
  func.func @transform_2(%arg0: i32, %arg1: i32) -> i32 {
    %c0_i32 = arith.constant 0 : i32
    %c0_i32_0 = arith.constant 0 : i32
    return %c0_i32 : i32
  }
  func.func @transform_3(%arg0: i32, %arg1: i32) -> (i32, i32, i32) {
    %c0_i32 = arith.constant 0 : i32
    %c0_i32_0 = arith.constant 0 : i32
    return %arg0, %c0_i32, %arg1 : i32, i32, i32
  }
}

</mosaic_0001>

<bundles_post_ra>
// kernel: tpu_custom_call.1
= control target key start
LH: loop header
LB: loop body
LE: loop exit
PB: predicated region body
PF: predicated region fallthrough
CT: control target
= control target key end

     0   :  { %s840_s0 = inlined_call_operand.hbm [shape: f32[2,4,256], index: 0, kind: input, shape index: {}]   ;;  %s841_s1 = inlined_call_operand.vmem [shape: f32[4], index: 1, kind: input, shape index: {}]   ;;  %s842_s2 = inlined_call_operand.<no memory space> [shape: f32[1], index: 2, kind: input, shape index: {}]   ;;  %s843_s3 = inlined_call_operand.hbm [shape: f32[2,4,256], index: 3, kind: output, shape index: {}]  }
   0x1   :  { %848 = sst [smem:[#allocation16_spill]] %s841_s1 }
   0x2   :  { %8 = sst [smem:[#allocation2]] %s842_s2 }
   0x3   :  { %9 = vsyncpa [#allocation4], 0 }
   0x4   :  { %11 = vsyncpa [#allocation4 + $0x1], 0 }
   0x5   :  { %12 = vsyncpa [#allocation6], 0 }
   0x6   :  { %13 = vsyncpa [#allocation5], 0 }
   0x7   :  { %15 = vsyncpa [#allocation5 + $0x1], 0  ;;  %s656_s14 = smov 0   ;;  %s658_s15 = smov 0  }
   0x8   :  { %s660_s16 = smov 0   ;;  %s662_s17 = smov 0  }
   0x9   :  { %s664_s18 = smov 0   ;;  %s666_s19 = smov 0  }
   0xa   :  { %s668_s20 = smov 0   ;;  %s670_s2 = smov 0  }
   0xb LB: > { %849 = sst [smem:[#allocation12_spill]] %s602_s14  ;;  %s370_s21 = sadd.s32 4294967295, %s630_s2   ;;  %s630_s2 = sphi %s670_s2, %s21_s2   ;;  %s626_s20 = sphi %s668_s20, %s871_s20   ;;  %s622_s19 = sphi %s666_s19, %s870_s19   ;;  %s618_s18 = sphi %s664_s18, %s869_s18   ;;  %s614_s17 = sphi %s662_s17, %s868_s17   ;;  %s610_s16 = sphi %s660_s16, %s867_s16   ;;  %s606_s15 = sphi %s658_s15, %s866_s15   ;;  %s602_s14 = sphi %s656_s14, %s865_s14  }
   0xc   : > { %s371_s22 = sadd.s32 4294967294, %s630_s2   ;;  %p55_p0 = scmp.ne.s32.totalorder %s606_s15, %s602_s14 }
   0xd   : > { %p700_p1 = scmp.eq.s32.totalorder %s370_s21, 0  ;;  %p704_p2 = scmp.eq.s32.totalorder %s370_s21, 3 }
   0xe   : > { %p129_p3 = scmp.eq.s32.totalorder %s371_s22, 3  ;;  %p372_p5 = scmp.ge.s32.totalorder %s630_s2, 1 }
   0xf   : > { %p710_p4 = por %p700_p1, %p55_p0  ;;  %p136_p7 = scmp.lt.s32.totalorder %s630_s2, 5 }
  0x10   : > { %p715_p6 = por %p129_p3, %p55_p0  ;;  %s855_s1 = sld [smem:[#allocation16_spill]] }
  0x11   : > { %p723_p8 = pnand %p372_p5, %p136_p7  ;;  %s30_s4 = sadd.s32 1, %s622_s19 }
  0x12   : > { %s853_s26 = scalar_select %p715_p6, 1, 0 }
  0x13   : > { %p398_p9 = pneg %p723_p8  ;;  %s632_s5 = smov [#allocation7]  }
  0x14   : > { %854 = sst [smem:[#allocation13_spill]] %s853_s26  ;;  %p31_p11 = scmp.ge.s32.totalorder %s30_s4, 2 }
  0x15   : > { %p399_p10 = pnand %p398_p9, %p700_p1  ;;  %s33_s6 = sadd.s32 1, %s626_s20 }
  0x16   : > { %s148_s29 = sshll.u32 %s855_s1, 4  ;;  %s42_s7 = sadd.s32 1, %s610_s16  ;;  %s149_s29 = int_to_ptr.vmem [resolvable:$true] %s148_s29 }
  0x17   : > { %401 = dma.vmem_to_smem (!%p399_p10), %s149_s29, 16, %s632_s5, [#allocation6]  }
  0x18   : > { %p49_p12 = scmp.ne.s32.totalorder %s610_s16, %s606_s15  ;;  %s873_s4 = smov (%p31_p11, %s30_s4), 0 }
  0x19   : > { %857 = sst [smem:[#allocation14_spill]] %s873_s4  ;;  %s875_s6 = smov (!%p31_p11, %s33_s6), %s626_s20 }
  0x1a   : > { %s38_s8 = ssub.s32 %s622_s19, %s873_s4  ;;  %p50_p13 = scmp.eq.s32.totalorder %s630_s2, 0 }
  0x1b   : > { %p35_p0 = scmp.ge.s32.totalorder %s875_s6, 2  ;;  %p744_p3 = por %p704_p2, %p49_p12 }
  0x1c   : > { %p748_p5 = por %p50_p13, %p49_p12  ;;  %p411_p7 = scmp.lt.s32.totalorder %s630_s2, 4 }
  0x1d   : > { %s877_s6 = smov (%p35_p0, %s875_s6), 0  ;;  %s162_s11 = sand.u32 1, %s610_s16  }
  0x1e   : > { %860 = sst [smem:[#allocation15_spill]] %s877_s6  ;;  %s376_s12 = sshll.u32 %s626_s20, 1 }
  0x1f   : > { %s37_s13 = ssub.s32 %s626_s20, %s877_s6  ;;  %s375_s22 = sshll.u32 %s162_s11, 2 }
  0x20   : > { %s39_s21 = sor.u32 %s38_s8, %s37_s13  ;;  %s170_s24 = sadd.s32 %s622_s19, %s376_s12 }
  0x21   : > { %p40_p9 = scmp.eq.s32.totalorder %s39_s21, 0  ;;  %s166_s27 = scalar_lea.vmem [#allocation3], %s375_s22 }
  0x22   : > { %s176_s28 = sshll.u32 %s166_s27, 4  ;;  %s377_s5 = sshll.u32 %s170_s24, 2  ;;  %s177_s28 = int_to_ptr.vmem [resolvable:$true] %s176_s28 }
  0x23   : > { %s761_s29 = scalar_select %p40_p9, %s610_s16, %s42_s7  }
  0x24   : > { %s172_s26 = scalar_lea.hbm %s840_s0, %s377_s5  ;;  %p403_p2 = pnand %p411_p7, %p748_p5 }
  0x25   : > { %s174_s14 = sshll.u32 %s172_s26, 4  ;;  %s163_s6 = scalar_lea.sflag [#allocation4], %s162_s11  ;;  %s175_s14 = int_to_ptr.hbm [resolvable:$true] %s174_s14 }
  0x26   : > { %405 = dma.hbm_to_vmem [thread:$0]  (!%p403_p2), %s175_s14, 64, %s177_s28, %s163_s6  }
  0x27   : > { %185 = sbr.rel (%p723_p8) target bundleno = 100 (0x64), region = 32  ;;  %s773_s7 = sand.u32 (!%p723_p8), 1, %s606_s15  }
  0x28   : > { %s379_s8 = sshll.u32 (!%p723_p8), %s773_s7, 2  ;;  %s188_s1 = scalar_lea.sflag (!%p723_p8), [#allocation4], %s773_s7 }
  0x29   : > { %s779_s4 = scalar_lea.vmem (!%p723_p8), [#allocation3], %s379_s8 }
  0x2c   : > { %589 = dma.done.wait (%p710_p4), %s188_s1, 64  }
  0x2d   : > { %591 = vsyncadd (%p710_p4), %s188_s1, 4294967232 }
  0x2e   : > { %593 = dma.done.wait (%p700_p1), [#allocation6], 16  }
  0x2f   : > { %595 = vsyncadd (%p700_p1), [#allocation6], 4294967280 }
  0x30   : > { %202 = sfence }
  0x31   : > { %s222_s14 = sld [smem:[#allocation7]]  ;;  %v221_v0 = vld [vmem:[%s779_s4] sm:$0x1]  ;;  %v225_v1 = vld [vmem:[%s779_s4 + $0x1] sm:$0x1]  ;;  %s386_s23 = sshll.u32 %s618_s18, 1 }
  0x32   : > { %s382_s26 = sld [smem:[#allocation7 + $0x1]]  ;;  %v230_v3 = vld [vmem:[%s779_s4 + $0x2] sm:$0x1]  ;;  %v235_v6 = vld [vmem:[%s779_s4 + $0x3] sm:$0x1]  ;;  %s266_s25 = sadd.s32 %s614_s17, %s386_s23 }
  0x33   : > { %s383_s30 = sld [smem:[#allocation7 + $0x2]]  ;;  %s387_s11 = sshll.u32 %s266_s25, 2  ;;  %v251_v25 = vld [vmem:[%s779_s4] sm:$0xf] }
  0x34   : > { %s384_s6 = sld [smem:[#allocation7 + $0x3]]  ;;  %s268_s21 = scalar_lea.hbm %s843_s3, %s387_s11 }
  0x35   : > { %s240_s10 = sld [smem:[#allocation2]]  ;;  %s220_s22 = scalar_lea.vmem [#allocation8], %s379_s8 }
  0x36   : > { %s270_s24 = sshll.u32 %s220_s22, 4  ;;  %s272_s27 = sshll.u32 %s268_s21, 4  ;;  %s271_s24 = int_to_ptr.vmem [resolvable:$true] %s270_s24  ;;  %s273_s27 = int_to_ptr.hbm [resolvable:$true] %s272_s27 }
  0x37   : > { %v223_v2 = vstv %s222_s14  ;;  %s256_s17 = scalar_lea.sflag [#allocation5], %s773_s7  ;;  %s542_s18 = sshra.s32 %s273_s27, 4  ;;  %s543_s18 = int_to_ptr.hbm [resolvable:$true] %s542_s18 }
  0x38   : > { %v224_v4 = vmul.f32 %v223_v2, %v221_v0  ;;  %v227_v5 = vstv %s382_s26  ;;  %s544_s28 = scalar_lea.hbm %s543_s18, 4  ;;  %s548_s8 = scalar_lea.hbm %s843_s3, 16 }
  0x39   : > { %v228_v7 = vmul.f32 %v227_v5, %v225_v1  ;;  %v232_v8 = vstv %s383_s30  ;;  %p545_p1 = scmp.ne.s32.totalorder %s543_s18, %s544_s28  ;;  %p549_p10 = scmp.lt.s32.totalorder %s543_s18, %s843_s3 }
  0x3a   : > { %v233_v9 = vmul.f32 %v232_v8, %v230_v3  ;;  %v237_v10 = vstv %s384_s6  ;;  %p550_p11 = scmp.lt.s32.totalorder %s548_s8, %s544_s28 }
  0x3b   : > { %v229_v11 = vadd.f32 %v228_v7, %v224_v4  ;;  %v238_v12 = vmul.f32 %v237_v10, %v235_v6  ;;  %v241_v14 = vstv %s240_s10  ;;  %p546_p4 = pnand %p545_p1, %p744_p3 }
  0x3c   : > { %p551_p12 = por %p550_p11, %p549_p10 }
  0x3d   : > { %v234_v13 = vadd.f32 %v233_v9, %v229_v11  ;;  %p547_p8 = pneg %p546_p4 }
  0x3f   : > { %v239_v15 = vadd.f32 %v238_v12, %v234_v13  ;;  %p552_p13 = pnand %p551_p12, %p547_p8 }
  0x41   : > { %v242_v16 = vadd.f32 %v241_v14, %v239_v15 }
  0x43   : > { %v243_v17 = vsub.f32 0.0, %v242_v16 }
  0x45   : > { %v244_v18 = vmul.f32 1.442695, %v243_v17 }
  0x47   : > { %479 = vpow2.f32 %v244_v18 }
  0x4d   : > { %v480_v19 = vpop.eup %479 }
  0x4e   : > { %v246_v20 = vadd.f32 1.0, %v480_v19 }
  0x50   : > { %481 = vrcp.f32 %v246_v20 }
  0x56   : > { %v482_v21 = vpop.eup %481 }
  0x57   : > { %v248_v22 = vmul.f32 %v482_v21, %v246_v20 }
  0x59   : > { %v249_v23 = vsub.f32 2.0, %v248_v22 }
  0x5b   : > { %v250_v24 = vmul.f32 %v482_v21, %v249_v23 }
  0x5d   : > { %v252_v26 = vperm.slane %v250_v24, 0 }
  0x5f   : > { %v253_v27 = vmul.f32 %v252_v26, %v251_v25 }
  0x61   : > { %254 = vst [vmem:[%s220_s22] sm:$0xf] %v253_v27 }
  0x62   : > { %555 = shalt.err (!%p552_p13)
}
  0x63   : > { %396 = dma.vmem_to_hbm [thread:$0]  (%p744_p3), %s271_s24, 64, %s273_s27, %s256_s17  }
  0x64 PF: > { %s861_s7 = sld [smem:[#allocation12_spill]]  ;;  %p413_p0 = scmp.ge.s32.totalorder %s630_s2, 2 }
  0x66   : > { %p407_p5 = pnand %p413_p0, %p715_p6 }
  0x68   : > { %p408_p7 = pneg %p407_p5 }
  0x6a   : > { %s284_s30 = sand.u32 1, %s861_s7  }
  0x6b   : > { %s285_s6 = scalar_lea.sflag [#allocation5], %s284_s30 }
  0x6c   : > { %597 = dma.done.wait (%p408_p7), %s285_s6, 64  }
  0x6d   : > { %599 = vsyncadd (%p408_p7), %s285_s6, 4294967232  ;;  %s21_s2 = sadd.s32 1, %s630_s2   ;;  %s863_s9 = sld [smem:[#allocation14_spill]] }
  0x6e   : > { %p18_p9 = scmp.ge.s32.totalorder %s21_s2, 6   ;;  %s864_s10 = sld [smem:[#allocation15_spill]] }
  0x6f   : > { %s865_s14 = smov %s606_s15  ;;  %s866_s15 = smov %s610_s16 }
  0x70   : > { %s867_s16 = smov %s761_s29  ;;  %s868_s17 = smov %s622_s19 }
  0x71   : > { %s869_s18 = smov %s626_s20  ;;  %20 = sbr.rel (!%p18_p9) target bundleno = 11 (0xb), region = 82 }
  0x73   : > { %s870_s19 = smov %s863_s9 }
  0x74   : > { %s871_s20 = smov %s864_s10 }
  0x76   :  { %291 = vsyncpa [#allocation4], 1 }
  0x77   :  { %293 = vsyncpa [#allocation4 + $0x1], 1 }
  0x78   :  { %294 = vsyncpa [#allocation5], 1 }
  0x79   :  { %296 = vsyncpa [#allocation5 + $0x1], 1 }
  0x7a   :  { %297 = vsyncpa [#allocation6], 1 }
  0x7b   :  { %299 = vsyncpa [#allocation6 + $0x1], 1 }

</bundles_post_ra>
